<compile_context>
chip_gen: v5e
topology: v5e:2x2
jax: 0.10.0
libtpu: 0.0.40
codegen_flags: <defaults>
</compile_context>

<pallas_src>
import math
import functools

import jax
import jax.numpy as jnp
from jax.experimental import pallas as pl
from jax.experimental.pallas import tpu as pltpu


# ----------------------------- hyper-params ---------------------------------
EMB_SIZE = 32          # args.emb_size
NUM_CLASSES = 256      # num_classes
BATCH = 8              # batch size for the example

MARGIN_M = 0.5         # args.margin_m
MARGIN_S = 64.0        # args.margin_s
EASY_MARGIN = False    # args.easy_margin

COS_M = math.cos(MARGIN_M)
SIN_M = math.sin(MARGIN_M)
TH = math.cos(math.pi - MARGIN_M)
MM = math.sin(math.pi - MARGIN_M) * MARGIN_M
EPS = 1e-12            # F.normalize default eps

# Tiling policy (per perf review): big class tiles (several us of W DMA per
# step) to amortize the ~0.35 us/step pipeline overhead, but keep the
# double-buffered working set ~20 MiB so it fits every generation's per-core
# VMEM (v5e 16 MiB default scoped limit -> raised explicitly below; v7x has
# 64 MiB physical per TC).  The budget scales with E, so larger embeddings
# (e.g. E=512) automatically get smaller class tiles.
_MAX_TILE_CLASSES = 32768
_VMEM_TILE_BUDGET = 20 * 1024 * 1024


# ------------------------------- kernel --------------------------------------
def arc_margin_kernel(xn_ref, w_ref, lab_ref, o_ref, *, easy_margin):
    """One class tile: o[:, j*Tc:(j+1)*Tc] = ArcFace logits for that tile.

    xn_ref : (B, E)  f32, already L2-normalized by the wrapper
    w_ref  : (Tc, E) bf16/f32 class-weight tile streamed from HBM
    lab_ref: (B, 1)  int32 labels
    o_ref  : (B, Tc) output logits tile (lane-dense: Tc % 128 == 0)
    """
    # Fold the ArcFace scale s into the tiny (B, E) lhs so the MXU emits
    # s*cosine directly and the (B, Tc) tile never needs a vmul.
    xs = xn_ref[...].astype(jnp.float32) * MARGIN_S

    # Upcast the streamed (possibly bf16) weight tile and L2-normalize in f32.
    # rsqrt goes to the EUP (free slot); the sum-of-squares reduce to the XLU.
    w = w_ref[...].astype(jnp.float32)
    wn = w * jax.lax.rsqrt(jnp.sum(w * w, axis=-1, keepdims=True) + EPS * EPS)

    # s*cosine = (s*xn) @ wn.T without an in-kernel transpose: contract the
    # feature axis (dim 1) of both operands on the MXU, f32 accumulation.
    s_cos = jax.lax.dot_general(
        xs, wn,
        dimension_numbers=(((1,), (1,)), ((), ())),
        preferred_element_type=jnp.float32)

    b, tc = o_ref.shape
    class_ids = (jax.lax.broadcasted_iota(jnp.int32, (b, tc), 1)
                 + pl.program_id(0) * tc)
    is_label = class_ids == lab_ref[...]                          # (B, Tc)

    # ArcFace margin only affects the label column, so run the sqrt/phi/where
    # chain on a (B, 1) vector instead of the whole (B, Tc) tile: extract the
    # label-class (scaled) cosine with a masked cross-lane reduce, unscale,
    # compute phi, then select.  Rows whose label lies outside this tile never
    # match, so their (meaningless) phi is never written.
    cos_lab = jnp.sum(jnp.where(is_label, s_cos, 0.0),
                      axis=-1, keepdims=True) * (1.0 / MARGIN_S)  # (B, 1)
    sin_lab = jnp.sqrt(jnp.maximum(0.0, 1.0 - cos_lab * cos_lab))
    phi_lab = cos_lab * COS_M - sin_lab * SIN_M
    if easy_margin:
        phi_lab = jnp.where(cos_lab > 0.0, phi_lab, cos_lab)
    else:
        phi_lab = jnp.where(cos_lab > TH, phi_lab, cos_lab - MM)

    o_ref[...] = jnp.where(is_label, phi_lab * MARGIN_S, s_cos).astype(o_ref.dtype)


# --------------------------- tile-size selection ------------------------------
def _tile_bytes(tile_c, emb, batch, w_itemsize, out_itemsize):
    w_buf = 2 * tile_c * emb * w_itemsize            # double-buffered W stream
    out_buf = 2 * batch * tile_c * out_itemsize      # double-buffered out tile
    interm = 2 * tile_c * emb * 4                    # f32 upcast + wn
    interm += 3 * batch * tile_c * 4                 # s_cos / mask / select temps
    return w_buf + out_buf + interm


def _pick_tile_c(num_classes, emb, batch, w_itemsize, out_itemsize):
    c = num_classes
    if c % 128 != 0 or c <= 128:
        return c                                     # tiny / ragged: single block
    tile = min(c, _MAX_TILE_CLASSES)
    tile -= tile % 128
    # Shrink until the tile divides C and its working set fits the VMEM budget.
    while tile > 128 and (c % tile != 0 or
                          _tile_bytes(tile, emb, batch, w_itemsize, out_itemsize)
                          > _VMEM_TILE_BUDGET):
        tile -= 128
    # Prefer >= 2 grid steps so "parallel" can shard classes on v7x's two TCs.
    if tile == c:
        half = c // 2
        if half % 128 == 0:
            tile = half
    return max(tile, 128)


# ------------------------------- wrapper --------------------------------------
def arc_margin_forward(x, weight, label, *, easy_margin=EASY_MARGIN,
                       tile_c=None, stream_weight_bf16=True,
                       out_dtype=jnp.float32):
    """x: (B, E) f32, weight: (C, E) f32, label: (B,) int -> (B, C) logits."""
    B, E = x.shape
    C, E2 = weight.shape
    assert E == E2

    # x is ~KiB-sized: normalize it once here (exact torch F.normalize formula)
    # instead of re-normalizing it on every class tile inside the kernel.
    xn = x.astype(jnp.float32)
    xn = xn / jnp.maximum(jnp.linalg.norm(xn, axis=-1, keepdims=True), EPS)

    # W dominates HBM traffic (E bytes/class each way): stream it in bf16 and
    # upcast / normalize / accumulate in f32 inside the kernel.  (In a real
    # training step the weight would simply be stored in bf16 in HBM.)
    w_stream = weight.astype(jnp.bfloat16) if stream_weight_bf16 else weight
    w_itemsize = jnp.dtype(w_stream.dtype).itemsize
    out_itemsize = jnp.dtype(out_dtype).itemsize

    if tile_c is None:
        tile_c = _pick_tile_c(C, E, B, w_itemsize, out_itemsize)
    tile_c = min(tile_c, C)
    assert C % tile_c == 0, "num_classes must be a multiple of tile_c"
    assert tile_c == C or tile_c % 128 == 0, "tile_c must be a multiple of 128"

    # Raise the scoped-VMEM cap so large class tiles also work under v5e's
    # 16 MiB default; stay well under v7x's 64 MiB per-TC physical VMEM.
    vmem_need = _tile_bytes(tile_c, E, B, w_itemsize, out_itemsize) + (B * E + B) * 4
    vmem_limit = int(min(max(2 * vmem_need, 32 * 1024 * 1024), 48 * 1024 * 1024))

    lab2d = label.reshape(B, 1).astype(jnp.int32)
    kernel = functools.partial(arc_margin_kernel, easy_margin=easy_margin)

    return pl.pallas_call(
        kernel,
        out_shape=jax.ShapeDtypeStruct((B, C), out_dtype),
        grid_spec=pltpu.PrefetchScalarGridSpec(
            num_scalar_prefetch=0,
            grid=(C // tile_c,),
            in_specs=[
                pl.BlockSpec((B, E), lambda j: (0, 0)),        # xn (resident)
                pl.BlockSpec((tile_c, E), lambda j: (j, 0)),   # W tile (streamed)
                pl.BlockSpec((B, 1), lambda j: (0, 0)),        # labels (resident)
            ],
            out_specs=pl.BlockSpec((B, tile_c), lambda j: (0, j)),
        ),
        compiler_params=pltpu.CompilerParams(
            # class tiles are independent -> shard across v7x's two TensorCores
            dimension_semantics=("parallel",),
            vmem_limit_bytes=vmem_limit),
    )(xn, w_stream, lab2d)


# --------------------------- pure-JAX reference --------------------------------
def arc_margin_ref(x, weight, label, *, easy_margin=EASY_MARGIN):
    xn = x / jnp.maximum(jnp.linalg.norm(x, axis=-1, keepdims=True), EPS)
    wn = weight / jnp.maximum(jnp.linalg.norm(weight, axis=-1, keepdims=True), EPS)
    cosine = xn @ wn.T
    sine = jnp.sqrt(jnp.maximum(0.0, 1.0 - cosine * cosine))
    phi = cosine * COS_M - sine * SIN_M
    if easy_margin:
        phi = jnp.where(cosine > 0.0, phi, cosine)
    else:
        phi = jnp.where(cosine > TH, phi, cosine - MM)
    one_hot = jax.nn.one_hot(label, cosine.shape[1], dtype=cosine.dtype)
    return (one_hot * phi + (1.0 - one_hot) * cosine) * MARGIN_S


if __name__ == "__main__":
    key = jax.random.PRNGKey(0)
    k_x, k_w, k_l = jax.random.split(key, 3)

    # deterministic xavier_uniform init for the weight (num_classes, emb_size)
    bound = math.sqrt(6.0 / (NUM_CLASSES + EMB_SIZE))
    weight = jax.random.uniform(
        k_w, (NUM_CLASSES, EMB_SIZE), jnp.float32, minval=-bound, maxval=bound)

    x = jax.random.normal(k_x, (BATCH, EMB_SIZE), jnp.float32)
    label = jax.random.randint(k_l, (BATCH,), 0, NUM_CLASSES, dtype=jnp.int32)

    # 1) full-precision W stream vs. f32 reference (tight check)
    out_f32 = jax.block_until_ready(
        arc_margin_forward(x, weight, label, stream_weight_bf16=False))
    ref_f32 = arc_margin_ref(x, weight, label)
    assert out_f32.shape == (BATCH, NUM_CLASSES)
    assert jnp.allclose(out_f32, ref_f32, atol=1e-3, rtol=1e-3), "f32 mismatch"

    # 2) default bf16 W stream vs. a reference fed the same bf16 weights
    out_bf16w = jax.block_until_ready(arc_margin_forward(x, weight, label))
    ref_bf16w = arc_margin_ref(
        x, weight.astype(jnp.bfloat16).astype(jnp.float32), label)
    assert jnp.allclose(out_bf16w, ref_bf16w, atol=5e-3, rtol=5e-3), "bf16 mismatch"

    print("KERNEL_OK")
</pallas_src>

<mosaic_0001>
module attributes {stable_mosaic.version = 11 : i64} {
  func.func @arc_margin_kernel(%arg0: i32, %arg1: memref<8x32xf32, #tpu.memory_space<vmem>>, %arg2: memref<128x32xf32, #tpu.memory_space<vmem>>, %arg3: memref<8x1xi32, #tpu.memory_space<vmem>>, %arg4: memref<8x128xf32, #tpu.memory_space<vmem>>) attributes {dimension_semantics = [#tpu.dimension_semantics<parallel>], iteration_bounds = array<i64: 2>, scalar_prefetch = 0 : i64, scratch_operands = 0 : i64, tpu.core_type = #tpu.core_type<tc>, window_params = [{pipeline_mode = #tpu.pipeline_mode<synchronous>, transform_indices = @transform_0, window_bounds = array<i64: 8, 32>}, {transform_indices = @transform_1, window_bounds = array<i64: 128, 32>}, {pipeline_mode = #tpu.pipeline_mode<synchronous>, transform_indices = @transform_2, window_bounds = array<i64: 8, 1>}, {transform_indices = @transform_3, window_bounds = array<i64: 8, 128>}]} {
    %c0 = arith.constant 0 : index
    %c0_0 = arith.constant 0 : index
    %0 = vector.load %arg1[%c0, %c0_0] : memref<8x32xf32, #tpu.memory_space<vmem>>, vector<8x32xf32>
    %cst = arith.constant 6.400000e+01 : f32
    %1 = vector.broadcast %cst : f32 to vector<8x32xf32>
    %2 = arith.mulf %0, %1 : vector<8x32xf32>
    %c0_1 = arith.constant 0 : index
    %c0_2 = arith.constant 0 : index
    %3 = vector.load %arg2[%c0_1, %c0_2] : memref<128x32xf32, #tpu.memory_space<vmem>>, vector<128x32xf32>
    %4 = arith.mulf %3, %3 : vector<128x32xf32>
    %cst_3 = arith.constant dense<0.000000e+00> : vector<128xf32>
    %5 = vector.multi_reduction <add>, %4, %cst_3 [1] : vector<128x32xf32> to vector<128xf32>
    %6 = vector.shape_cast %5 : vector<128xf32> to vector<128x1xf32>
    %cst_4 = arith.constant 1.000000e-24 : f32
    %7 = vector.broadcast %cst_4 : f32 to vector<128x1xf32>
    %8 = arith.addf %6, %7 : vector<128x1xf32>
    %9 = math.rsqrt %8 : vector<128x1xf32>
    %10 = vector.broadcast %9 : vector<128x1xf32> to vector<128x32xf32>
    %11 = arith.mulf %3, %10 : vector<128x32xf32>
    %cst_5 = arith.constant dense<0.000000e+00> : vector<8x128xf32>
    %12 = tpu.matmul %2, %11, %cst_5 {dimension_numbers = #tpu.dot_dimension_numbers<[1], [1], [0], [0], [0, 0, 1, 0], [], []>} : vector<8x32xf32>, vector<128x32xf32>, vector<8x128xf32> -> vector<8x128xf32>
    %13 = tpu.iota {dimensions = array<i32: 1>} : vector<8x128xi32>
    %c128_i32 = arith.constant 128 : i32
    %14 = arith.muli %arg0, %c128_i32 : i32
    %15 = vector.broadcast %14 : i32 to vector<8x128xi32>
    %16 = arith.addi %13, %15 : vector<8x128xi32>
    %c0_6 = arith.constant 0 : index
    %c0_7 = arith.constant 0 : index
    %17 = vector.load %arg3[%c0_6, %c0_7] : memref<8x1xi32, #tpu.memory_space<vmem>>, vector<8x1xi32>
    %18 = vector.broadcast %17 : vector<8x1xi32> to vector<8x128xi32>
    %19 = arith.cmpi eq, %16, %18 : vector<8x128xi32>
    %cst_8 = arith.constant 0.000000e+00 : f32
    %20 = vector.broadcast %cst_8 : f32 to vector<8x128xf32>
    %21 = arith.select %19, %12, %20 : vector<8x128xi1>, vector<8x128xf32>
    %cst_9 = arith.constant dense<0.000000e+00> : vector<8xf32>
    %22 = vector.multi_reduction <add>, %21, %cst_9 [1] : vector<8x128xf32> to vector<8xf32>
    %23 = vector.shape_cast %22 : vector<8xf32> to vector<8x1xf32>
    %cst_10 = arith.constant 1.562500e-02 : f32
    %24 = vector.broadcast %cst_10 : f32 to vector<8x1xf32>
    %25 = arith.mulf %23, %24 : vector<8x1xf32>
    %26 = arith.mulf %25, %25 : vector<8x1xf32>
    %cst_11 = arith.constant 1.000000e+00 : f32
    %27 = vector.broadcast %cst_11 : f32 to vector<8x1xf32>
    %28 = arith.subf %27, %26 : vector<8x1xf32>
    %cst_12 = arith.constant 0.000000e+00 : f32
    %29 = vector.broadcast %cst_12 : f32 to vector<8x1xf32>
    %30 = arith.maximumf %29, %28 : vector<8x1xf32>
    %31 = math.sqrt %30 : vector<8x1xf32>
    %cst_13 = arith.constant 0.87758255 : f32
    %32 = vector.broadcast %cst_13 : f32 to vector<8x1xf32>
    %33 = arith.mulf %25, %32 : vector<8x1xf32>
    %cst_14 = arith.constant 0.47942555 : f32
    %34 = vector.broadcast %cst_14 : f32 to vector<8x1xf32>
    %35 = arith.mulf %31, %34 : vector<8x1xf32>
    %36 = arith.subf %33, %35 : vector<8x1xf32>
    %cst_15 = arith.constant -0.87758255 : f32
    %37 = vector.broadcast %cst_15 : f32 to vector<8x1xf32>
    %38 = arith.cmpf ogt, %25, %37 : vector<8x1xf32>
    %cst_16 = arith.constant 0.239712775 : f32
    %39 = vector.broadcast %cst_16 : f32 to vector<8x1xf32>
    %40 = arith.subf %25, %39 : vector<8x1xf32>
    %41 = arith.select %38, %36, %40 : vector<8x1xi1>, vector<8x1xf32>
    %cst_17 = arith.constant 6.400000e+01 : f32
    %42 = vector.broadcast %cst_17 : f32 to vector<8x1xf32>
    %43 = arith.mulf %41, %42 : vector<8x1xf32>
    %44 = vector.shape_cast %43 : vector<8x1xf32> to vector<8x1xf32>
    %45 = vector.broadcast %44 : vector<8x1xf32> to vector<8x128xf32>
    %46 = arith.select %19, %45, %12 : vector<8x128xi1>, vector<8x128xf32>
    %c0_18 = arith.constant 0 : index
    %c0_19 = arith.constant 0 : index
    %47 = vector.load %arg4[%c0_18, %c0_19] : memref<8x128xf32, #tpu.memory_space<vmem>>, vector<8x128xf32>
    tpu.vector_store %arg4[%c0_18, %c0_19], %46 {strides = array<i32>} : memref<8x128xf32, #tpu.memory_space<vmem>>, vector<8x128xf32>,
    return
  }
  func.func @transform_0(%arg0: i32) -> (i32, i32) {
    %c0_i32 = arith.constant 0 : i32
    %c0_i32_0 = arith.constant 0 : i32
    %c0_i32_1 = arith.constant 0 : i32
    return %c0_i32, %c0_i32_0 : i32, i32
  }
  func.func @transform_1(%arg0: i32) -> (i32, i32) {
    %c0_i32 = arith.constant 0 : i32
    %c0_i32_0 = arith.constant 0 : i32
    return %arg0, %c0_i32 : i32, i32
  }
  func.func @transform_2(%arg0: i32) -> (i32, i32) {
    %c0_i32 = arith.constant 0 : i32
    %c0_i32_0 = arith.constant 0 : i32
    %c0_i32_1 = arith.constant 0 : i32
    return %c0_i32, %c0_i32_0 : i32, i32
  }
  func.func @transform_3(%arg0: i32) -> (i32, i32) {
    %c0_i32 = arith.constant 0 : i32
    %c0_i32_0 = arith.constant 0 : i32
    return %c0_i32, %arg0 : i32, i32
  }
}

</mosaic_0001>

<bundles_post_ra>
// kernel: tpu_custom_call.1
= control target key start
LH: loop header
LB: loop body
LE: loop exit
PB: predicated region body
PF: predicated region fallthrough
CT: control target
= control target key end

     0   :  { %8 = vsyncpa [#allocation3], 0  ;;  %s1272_s0 = inlined_call_operand.vmem [shape: f32[8,32], index: 0, kind: input, shape index: {}]   ;;  %s1273_s1 = inlined_call_operand.vmem [shape: f32[256,32], index: 1, kind: input, shape index: {}]   ;;  %s1274_s2 = inlined_call_operand.vmem [shape: s32[8,1], index: 2, kind: input, shape index: {}]   ;;  %s1275_s3 = inlined_call_operand.hbm [shape: f32[8,256], index: 3, kind: output, shape index: {}]  }
   0x1   :  { %10 = vsyncpa [#allocation3 + $0x1], 0  ;;  %s821_s12 = smov 0   ;;  %s823_s13 = smov 0  }
   0x2   :  { %s825_s14 = smov 0   ;;  %s827_s15 = smov 0  }
   0x3 LB: > { %s842_s16 = sadd.s32 4294967295, %s798_s15   ;;  %s630_s17 = sadd.s32 4294967294, %s798_s15   ;;  %s798_s15 = sphi %s827_s15, %s1299_s15   ;;  %s794_s14 = sphi %s825_s14, %s1298_s14   ;;  %s790_s13 = sphi %s823_s13, %s1297_s13   ;;  %s786_s12 = sphi %s821_s12, %s1296_s12  }
   0x4   : > { %s846_s18 = sadd.s32 1, %s798_s15   ;;  %s91_s19 = sadd.s32 1, %s794_s14 }
   0x5   : > { %s88_s20 = ssub.s32 %s798_s15, %s846_s18  ;;  %p101_p0 = scmp.ne.s32.totalorder %s794_s14, %s790_s13 }
   0x6   : > { %p89_p1 = scmp.eq.s32.totalorder %s88_s20, 0  ;;  %p102_p2 = scmp.eq.s32.totalorder %s842_s16, 1 }
   0x7   : > { %p107_p3 = scmp.ne.s32.totalorder %s790_s13, %s786_s12  ;;  %p108_p4 = scmp.eq.s32.totalorder %s630_s17, 1 }
   0x8   : > { %s857_s21 = scalar_select %p89_p1, %s794_s14, %s91_s19  }
   0x9   : > { %p859_p5 = por %p102_p2, %p101_p0  ;;  %p863_p6 = por %p108_p4, %p107_p3 }
   0xa   : > { %p633_p7 = scmp.ge.s32.totalorder %s798_s15, 1  ;;  %p141_p8 = scmp.lt.s32.totalorder %s798_s15, 3 }
   0xc   : > { %p142_p9 = pnand %p633_p7, %p141_p8 }
   0xd   : > { %s635_s24 = sshll.u32 (!%p142_p9), %s842_s16, 4  ;;  %s654_s6 = sshll.u32 (!%p142_p9), %s842_s16, 7 }
   0xe   : > { %145 = sbr.rel (%p142_p9) target bundleno = 514 (0x202), region = 32  ;;  %p166_p10 = scmp.lt.s32.totalorder (!%p142_p9), %s635_s24, 31 }
   0xf   : > { %s162_s7 = sand.u32 (!%p142_p9), 1, %s790_s13   ;;  %s657_s9 = sshll.u32 (!%p142_p9), %s842_s16, 3 }
  0x10   : > { %s634_s8 = sshll.u32 (!%p142_p9), %s162_s7, 3  ;;  %s566_s17 = scalar_lea.hbm (!%p142_p9), %s1275_s3, %s657_s9 }
  0x11   : > { %s164_s19 = scalar_lea.vmem (!%p142_p9), [#allocation2], %s634_s8  ;;  %s556_s16 = scalar_lea.sflag (!%p142_p9), [#allocation3], %s162_s7 }
  0x12   : > { %s568_s20 = sshll.u32 (!%p142_p9), %s164_s19, 4  ;;  %s756_s29 = scalar_lea.hbm (!%p142_p9), %s1275_s3, 16  ;;  %s569_s20 = int_to_ptr.vmem [resolvable:$true] %s568_s20 }
  0x13   : > { %s1301_s24 = smov (!%p166_p10, %s635_s24), 31  ;;  %vm205_vm0 = vcmask 261120  }
  0x14   : > { %s636_s25 = sshll.u32 %s1301_s24, 3  ;;  %s570_s24 = sshll.u32 %s566_s17, 4  ;;  %s571_s24 = int_to_ptr.hbm [resolvable:$true] %s570_s24 }
  0x15   : > { %s873_s28 = scalar_lea.vmem %s1273_s1, %s636_s25  ;;  %s750_s25 = sshra.s32 %s571_s24, 4  ;;  %s751_s25 = int_to_ptr.hbm [resolvable:$true] %s750_s25 }
  0x16   : > { %v876_v0 = vld [vmem:[%s873_s28 + $0x78] sm:$0xff]  ;;  %v879_v1 = vld [vmem:[%s873_s28 + $0x68] sm:$0xff]  ;;  %v891_v6 = vld [vmem:[%s873_s28 + $0x70] sm:$0xff]  ;;  %s752_s26 = scalar_lea.hbm %s751_s25, 8  ;;  %p757_p0 = scmp.lt.s32.totalorder %s751_s25, %s1275_s3 }
  0x17   : > { %v882_v2 = vld [vmem:[%s873_s28 + $0x58] sm:$0xff]  ;;  %v204_v3 = vmul.f32 %v876_v0, %v876_v0  ;;  %v202_v4 = vmul.f32 %v879_v1, %v879_v1  ;;  %v894_v7 = vld [vmem:[%s873_s28 + $0x60] sm:$0xff]  ;;  %v900_v11 = vld [vmem:[%s873_s28 + $0x50] sm:$0xff]  ;;  %v203_v12 = vmul.f32 %v891_v6, %v891_v6  ;;  %p753_p11 = scmp.ne.s32.totalorder %s751_s25, %s752_s26  ;;  %p758_p1 = scmp.lt.s32.totalorder %s756_s29, %s752_s26 }
  0x18   : > { %v200_v5 = vmul.f32 %v882_v2, %v882_v2  ;;  %v201_v13 = vmul.f32 %v894_v7, %v894_v7  ;;  %v199_v14 = vmul.f32 %v900_v11, %v900_v11  ;;  %v912_v18 = vld [vmem:[%s873_s28 + $0x48] sm:$0xff]  ;;  %v915_v19 = vld [vmem:[%s873_s28 + $0x40] sm:$0xff]  ;;  %v918_v20 = vld [vmem:[%s873_s28 + $0x38] sm:$0xff] }
  0x19   : > { %v251_v8 = vsel %vm205_vm0, %v204_v3, 0.0  ;;  %v245_v9 = vsel %vm205_vm0, %v202_v4, 0.0  ;;  %v248_v15 = vsel %vm205_vm0, %v203_v12, 0.0  ;;  %v198_v21 = vmul.f32 %v912_v18, %v912_v18  ;;  %v930_v27 = vld [vmem:[%s873_s28 + $0x30] sm:$0xff]  ;;  %v933_v28 = vld [vmem:[%s873_s28 + $0x28] sm:$0xff]  ;;  %v936_v29 = vld [vmem:[%s873_s28 + $0x20] sm:$0xff]  ;;  %p754_p12 = pnand %p753_p11, %p859_p5  ;;  %p759_p2 = por %p758_p1, %p757_p0 }
  0x1a   : > { %v239_v10 = vsel %vm205_vm0, %v200_v5, 0.0  ;;  %252 = vadd.xlane.f32.xlu0 %v251_v8  ;;  %246 = vadd.xlane.f32.xlu1 %v245_v9  ;;  %v242_v16 = vsel %vm205_vm0, %v201_v13, 0.0  ;;  %v236_v17 = vsel %vm205_vm0, %v199_v14, 0.0  ;;  %v197_v22 = vmul.f32 %v915_v19, %v915_v19  ;;  %v948_v36 = vld [vmem:[%s873_s28 + $0x18] sm:$0xff]  ;;  %v951_v37 = vld [vmem:[%s873_s28 + $0x10] sm:$0xff]  ;;  %v954_v38 = vld [vmem:[%s873_s28 + $0x8] sm:$0xff] }
  0x1b   : > { %240 = vadd.xlane.f32.xlu2 %v239_v10  ;;  %v196_v23 = vmul.f32 %v918_v20, %v918_v20  ;;  %v233_v24 = vsel %vm205_vm0, %v198_v21, 0.0  ;;  %v195_v30 = vmul.f32 %v930_v27, %v930_v27  ;;  %v194_v31 = vmul.f32 %v933_v28, %v933_v28  ;;  %v966_v45 = vld [vmem:[%s873_s28] sm:$0xff]  ;;  %p755_p13 = pneg %p754_p12 }
  0x1c   : > { %v230_v25 = vsel %vm205_vm0, %v197_v22, 0.0  ;;  %v193_v32 = vmul.f32 %v936_v29, %v936_v29  ;;  %v192_v39 = vmul.f32 %v948_v36, %v948_v36  ;;  %v191_v40 = vmul.f32 %v951_v37, %v951_v37 }
  0x1d   : > { %v227_v26 = vsel %vm205_vm0, %v196_v23, 0.0  ;;  %v224_v33 = vsel %vm205_vm0, %v195_v30, 0.0  ;;  %v221_v34 = vsel %vm205_vm0, %v194_v31, 0.0  ;;  %v190_v41 = vmul.f32 %v954_v38, %v954_v38  ;;  %p760_p3 = pnand %p759_p2, %p755_p13 }
  0x1e   : > { %v218_v35 = vsel %vm205_vm0, %v193_v32, 0.0  ;;  %v215_v42 = vsel %vm205_vm0, %v192_v39, 0.0  ;;  %v212_v43 = vsel %vm205_vm0, %v191_v40, 0.0  ;;  %v189_v46 = vmul.f32 %v966_v45, %v966_v45 }
  0x1f   : > { %v209_v44 = vsel %vm205_vm0, %v190_v41, 0.0 }
  0x20   : > { %v206_v47 = vsel %vm205_vm0, %v189_v46, 0.0 }
  0x22   : > { %249 = vadd.xlane.f32.xlu0 %v248_v15  ;;  %243 = vadd.xlane.f32.xlu1 %v242_v16 }
  0x23   : > { %237 = vadd.xlane.f32.xlu2 %v236_v17 }
  0x2a   : > { %234 = vadd.xlane.f32.xlu0 %v233_v24  ;;  %231 = vadd.xlane.f32.xlu1 %v230_v25 }
  0x2b   : > { %228 = vadd.xlane.f32.xlu2 %v227_v26 }
  0x32   : > { %225 = vadd.xlane.f32.xlu0 %v224_v33  ;;  %222 = vadd.xlane.f32.xlu1 %v221_v34 }
  0x33   : > { %219 = vadd.xlane.f32.xlu2 %v218_v35 }
  0x3a   : > { %216 = vadd.xlane.f32.xlu0 %v215_v42  ;;  %213 = vadd.xlane.f32.xlu1 %v212_v43 }
  0x3b   : > { %210 = vadd.xlane.f32.xlu2 %v209_v44 }
  0x42   : > { %207 = vadd.xlane.f32.xlu0 %v206_v47 }
  0x8d   : > { %v253_v48 = vpop.xlane.xlu0 %252  ;;  %v247_v49 = vpop.xlane.xlu1 %246 }
  0x8e   : > { %v269_v50 = vadd.f32 1e-24, %v253_v48  ;;  %v971_v51 = vadd.f32 1e-24, %v247_v49  ;;  %v241_v52 = vpop.xlane.xlu2 %240 }
  0x8f   : > { %v974_v53 = vadd.f32 1e-24, %v241_v52 }
  0x90   : > { %702 = vrsqrt.f32 %v269_v50  ;;  %vm426_vm2 = vweird.f32 %v269_v50  ;;  %vm406_vm4 = vweird.f32 %v971_v51 }
  0x91   : > { %704 = vrsqrt.f32 %v971_v51  ;;  %vm386_vm12 = vweird.f32 %v974_v53 }
  0x92   : > { %706 = vrsqrt.f32 %v974_v53 }
  0x95   : > { %v250_v54 = vpop.xlane.xlu0 %249  ;;  %v244_v55 = vpop.xlane.xlu1 %243 }
  0x96   : > { %v703_v56 = vpop.eup %702  ;;  %v268_v57 = vadd.f32 1e-24, %v250_v54  ;;  %v977_v58 = vadd.f32 1e-24, %v244_v55  ;;  %v238_v59 = vpop.xlane.xlu2 %237 }
  0x97   : > { %v979_v60 = vpop.eup %704  ;;  %v421_v61 = vmul.f32 %v703_v56, %v269_v50  ;;  %v981_v62 = vadd.f32 1e-24, %v238_v59  ;;  %vm427_vm1 = vweird.f32 %v703_v56 }
  0x98   : > { %v401_v63 = vmul.f32 %v979_v60, %v971_v51  ;;  %708 = vrsqrt.f32 %v268_v57  ;;  %v986_v4 = vpop.eup %706  ;;  %vm428_vm3 = vmor %vm426_vm2, %vm427_vm1  ;;  %vm407_vm6 = vweird.f32 %v979_v60  ;;  %vm416_vm7 = vweird.f32 %v268_v57 }
  0x99   : > { %v422_v3 = vmul.f32 %v703_v56, %v421_v61  ;;  %710 = vrsqrt.f32 %v977_v58  ;;  %v381_v13 = vmul.f32 %v986_v4, %v974_v53  ;;  %vm396_vm9 = vweird.f32 %v977_v58  ;;  %vm1032_vm10 = vmor %vm406_vm4, %vm407_vm6 }
  0x9a   : > { %712 = vrsqrt.f32 %v981_v62  ;;  %v402_v8 = vmul.f32 %v979_v60, %v401_v63  ;;  %vm387_vm13 = vweird.f32 %v986_v4  ;;  %vm376_vm1 = vweird.f32 %v981_v62 }
  0x9b   : > { %v423_v5 = vmul.f32 0.5, %v422_v3  ;;  %v382_v30 = vmul.f32 %v986_v4, %v381_v13  ;;  %vm1072_vm15 = vmor %vm386_vm12, %vm387_vm13 }
  0x9c   : > { %v403_v23 = vmul.f32 0.5, %v402_v8 }
  0x9d   : > { %v235_v9 = vpop.xlane.xlu0 %234  ;;  %v232_v10 = vpop.xlane.xlu1 %231  ;;  %v424_v17 = vsub.f32 1.5, %v423_v5  ;;  %v383_v46 = vmul.f32 0.5, %v382_v30 }
  0x9e   : > { %v709_v12 = vpop.eup %708  ;;  %v992_v14 = vadd.f32 1e-24, %v235_v9  ;;  %v994_v15 = vadd.f32 1e-24, %v232_v10  ;;  %v229_v22 = vpop.xlane.xlu2 %228  ;;  %v404_v35 = vsub.f32 1.5, %v403_v23 }
  0x9f   : > { %v996_v16 = vpop.eup %710  ;;  %v411_v21 = vmul.f32 %v709_v12, %v268_v57  ;;  %v1006_v32 = vadd.f32 1e-24, %v229_v22  ;;  %v425_v34 = vmul.f32 %v703_v56, %v424_v17  ;;  %vm417_vm5 = vweird.f32 %v709_v12 }
  0xa0   : > { %v391_v24 = vmul.f32 %v996_v16, %v977_v58  ;;  %714 = vrsqrt.f32 %v992_v14  ;;  %v1001_v25 = vpop.eup %712  ;;  %v405_v59 = vmul.f32 %v979_v60, %v404_v35  ;;  %vm418_vm8 = vmor %vm416_vm7, %vm417_vm5  ;;  %v384_v61 = vsub.f32 1.5, %v383_v46 }
  0xa1   : > { %v412_v26 = vmul.f32 %v709_v12, %v411_v21  ;;  %716 = vrsqrt.f32 %v994_v15  ;;  %v371_v40 = vmul.f32 %v1001_v25, %v981_v62  ;;  %v429_v42 = vsel %vm428_vm3, %v703_v56, %v425_v34 }
  0xa2   : > { %v392_v31 = vmul.f32 %v996_v16, %v391_v24  ;;  %718 = vrsqrt.f32 %v1006_v32  ;;  %v445_v47 = vmul.f32 %v429_v42, %v876_v0  ;;  %vm397_vm11 = vweird.f32 %v996_v16 }
  0xa3   : > { %v413_v33 = vmul.f32 0.5, %v412_v26  ;;  %v372_v55 = vmul.f32 %v1001_v25, %v371_v40  ;;  %v409_v51 = vsel %vm1032_vm10, %v979_v60, %v405_v59  ;;  %vm1058_vm14 = vmor %vm396_vm9, %vm397_vm11  ;;  %v385_v58 = vmul.f32 %v986_v4, %v384_v61 }
  0xa4   : > { %v393_v39 = vmul.f32 0.5, %v392_v31  ;;  %637 = vmatpush.xpose.msk.msra.mxu0 %vm205_vm0, %v445_v47  ;;  %v443_v22 = vmul.f32 %v409_v51, %v879_v1  ;;  %vm377_vm2 = vweird.f32 %v1001_v25  ;;  %vm366_vm4 = vweird.f32 %v992_v14 }
  0xa5   : > { %v414_v41 = vsub.f32 1.5, %v413_v33  ;;  %v226_v43 = vpop.xlane.xlu0 %225  ;;  %v223_v48 = vpop.xlane.xlu1 %222  ;;  %v373_v10 = vmul.f32 0.5, %v372_v55  ;;  %v389_v62 = vsel %vm1072_vm15, %v986_v4, %v385_v58  ;;  %vm1092_vm3 = vmor %vm376_vm1, %vm377_vm2  ;;  %vm356_vm6 = vweird.f32 %v994_v15 }
  0xa6   : > { %v1011_v44 = vpop.eup %714  ;;  %v1016_v49 = vadd.f32 1e-24, %v226_v43  ;;  %v394_v54 = vsub.f32 1.5, %v393_v39  ;;  %v1025_v0 = vadd.f32 1e-24, %v223_v48  ;;  %v220_v8 = vpop.xlane.xlu2 %219  ;;  %v441_v4 = vmul.f32 %v389_v62, %v882_v2 }
  0xa7   : > { %v415_v50 = vmul.f32 %v709_v12, %v414_v41  ;;  %v1018_v52 = vpop.eup %716  ;;  %v361_v56 = vmul.f32 %v1011_v44, %v992_v14  ;;  %v374_v53 = vsub.f32 1.5, %v373_v10  ;;  %vm367_vm5 = vweird.f32 %v1011_v44 }
  0xa8   : > { %v351_v3 = vmul.f32 %v1018_v52, %v994_v15  ;;  %720 = vrsqrt.f32 %v1016_v49  ;;  %v1041_v9 = vpop.eup %718  ;;  %v395_v13 = vmul.f32 %v996_v16, %v394_v54  ;;  %vm357_vm7 = vweird.f32 %v1018_v52 }
  0xa9   : > { %v419_v57 = vsel %vm418_vm8, %v709_v12, %v415_v50  ;;  %v362_v12 = vmul.f32 %v1011_v44, %v361_v56  ;;  %722 = vrsqrt.f32 %v1025_v0  ;;  %v341_v21 = vmul.f32 %v1041_v9, %v1006_v32  ;;  %vm1121_vm8 = vmor %vm366_vm4, %vm367_vm5 }
  0xaa   : > { %v444_v5 = vmul.f32 %v419_v57, %v891_v6  ;;  %v1052_v6 = vadd.f32 1e-24, %v220_v8  ;;  %v352_v60 = vmul.f32 %v1018_v52, %v351_v3  ;;  %v399_v26 = vsel %vm1058_vm14, %v996_v16, %v395_v13  ;;  %vm1136_vm9 = vmor %vm356_vm6, %vm357_vm7 }
  0xab   : > { %v363_v23 = vmul.f32 0.5, %v362_v12  ;;  %v342_v16 = vmul.f32 %v1041_v9, %v341_v21  ;;  %v442_v35 = vmul.f32 %v399_v26, %v894_v7  ;;  %v375_v42 = vmul.f32 %v1001_v25, %v374_v53 }
  0xac   : > { %638 = vmatpush.xpose.msk.msra.mxu0 %vm205_vm0, %v444_v5  ;;  %724 = vrsqrt.f32 %v1052_v6  ;;  %v353_v33 = vmul.f32 0.5, %v352_v60  ;;  %vm346_vm10 = vweird.f32 %v1006_v32  ;;  %vm347_vm11 = vweird.f32 %v1041_v9 }
  0xad   : > { %v217_v24 = vpop.xlane.xlu0 %216  ;;  %v214_v39 = vpop.xlane.xlu1 %213  ;;  %v364_v40 = vsub.f32 1.5, %v363_v23  ;;  %v343_v47 = vmul.f32 0.5, %v342_v16  ;;  %v379_v56 = vsel %vm1092_vm3, %v1001_v25, %v375_v42  ;;  %vm1156_vm12 = vmor %vm346_vm10, %vm347_vm11  ;;  %vm336_vm13 = vweird.f32 %v1016_v49 }
  0xae   : > { %v1070_v30 = vpop.eup %720  ;;  %v1083_v34 = vadd.f32 1e-24, %v217_v24  ;;  %v1100_v46 = vadd.f32 1e-24, %v214_v39  ;;  %v354_v50 = vsub.f32 1.5, %v353_v33  ;;  %v211_v55 = vpop.xlane.xlu2 %210  ;;  %v440_v15 = vmul.f32 %v379_v56, %v900_v11 }
  0xaf   : > { %v1080_v1 = vpop.eup %722  ;;  %v331_v41 = vmul.f32 %v1070_v30, %v1016_v49  ;;  %v365_v59 = vmul.f32 %v1011_v44, %v364_v40  ;;  %v1127_v57 = vadd.f32 1e-24, %v211_v55  ;;  %v344_v63 = vsub.f32 1.5, %v343_v47 }
  0xb0   : > { %639 = vmatpush.xpose.msk.msra.mxu0 %vm205_vm0, %v443_v22  ;;  %v321_v7 = vmul.f32 %v1080_v1, %v1025_v0  ;;  %726 = vrsqrt.f32 %v1083_v34  ;;  %v355_v14 = vmul.f32 %v1018_v52, %v354_v50  ;;  %vm337_vm14 = vweird.f32 %v1070_v30 }
  0xb1   : > { %v332_v54 = vmul.f32 %v1070_v30, %v331_v41  ;;  %728 = vrsqrt.f32 %v1100_v46  ;;  %v369_v8 = vsel %vm1121_vm8, %v1011_v44, %v365_v59  ;;  %v345_v22 = vmul.f32 %v1041_v9, %v344_v63  ;;  %vm1174_vm15 = vmor %vm336_vm13, %vm337_vm14 }
  0xb2   : > { %v1105_v48 = vpop.eup %724  ;;  %v322_v2 = vmul.f32 %v1080_v1, %v321_v7  ;;  %730 = vrsqrt.f32 %v1127_v57  ;;  %v439_v13 = vmul.f32 %v369_v8, %v912_v18  ;;  %v359_v32 = vsel %vm1136_vm9, %v1018_v52, %v355_v14  ;;  %v171_v8 = vld [vmem:[%s1272_s0] sm:$0xff] }
  0xb3   : > { %v311_v25 = vmul.f32 %v1105_v48, %v1052_v6  ;;  %v333_v3 = vmul.f32 0.5, %v332_v54  ;;  %v438_v52 = vmul.f32 %v359_v32, %v915_v19  ;;  %v349_v58 = vsel %vm1156_vm12, %v1041_v9, %v345_v22 }
  0xb4   : > { %640 = vmatpush.xpose.msk.msra.mxu0 %vm205_vm0, %v442_v35  ;;  %v323_v11 = vmul.f32 0.5, %v322_v2  ;;  %vm326_vm1 = vweird.f32 %v1025_v0  ;;  %vm327_vm2 = vweird.f32 %v1080_v1  ;;  %v437_v35 = vmul.f32 %v349_v58, %v918_v20  ;;  %v522_v0 = vld [vmem:[%s1274_s2] sm:$0xff] }
  0xb5   : > { %v208_v5 = vpop.xlane.xlu0 %207  ;;  %v312_v51 = vmul.f32 %v1105_v48, %v311_v25  ;;  %v334_v60 = vsub.f32 1.5, %v333_v3  ;;  %vm1192_vm3 = vmor %vm326_vm1, %vm327_vm2  ;;  %v800_v20 = vmov 0   ;;  %vm316_vm4 = vweird.f32 %v1052_v6 }
  0xb6   : > { %v1134_v10 = vpop.eup %726  ;;  %v1145_v44 = vadd.f32 1e-24, %v208_v5  ;;  %v324_v18 = vsub.f32 1.5, %v323_v11  ;;  %700 = vset.pattern.permute.xlu1 %v800_v20  ;;  %vm317_vm5 = vweird.f32 %v1105_v48  ;;  %701 = vset.pattern.permute.xlu0 %v800_v20  ;;  %vm306_vm7 = vweird.f32 %v1083_v34 }
  0xb7   : > { %v1148_v17 = vpop.eup %728  ;;  %v301_v21 = vmul.f32 %v1134_v10, %v1083_v34  ;;  %v313_v23 = vmul.f32 0.5, %v312_v51  ;;  %v335_v31 = vmul.f32 %v1070_v30, %v334_v60  ;;  %524 = vperm.xlu1 %700, %v522_v0   ;;  %vm318_vm6 = vmor %vm316_vm4, %vm317_vm5  ;;  %vm307_vm8 = vweird.f32 %v1134_v10 }
  0xb8   : > { %641 = vmatpush.xpose.msk.msra.mxu0 %vm205_vm0, %v441_v4  ;;  %v291_v24 = vmul.f32 %v1148_v17, %v1100_v46  ;;  %732 = vrsqrt.f32 %v1145_v44  ;;  %v1172_v49 = vpop.eup %730  ;;  %v325_v9 = vmul.f32 %v1080_v1, %v324_v18  ;;  %vm308_vm9 = vmor %vm306_vm7, %vm307_vm8  ;;  %vm296_vm10 = vweird.f32 %v1100_v46 }
  0xb9   : > { %v302_v26 = vmul.f32 %v1134_v10, %v301_v21  ;;  %v314_v19 = vsub.f32 1.5, %v313_v23  ;;  %v281_v40 = vmul.f32 %v1172_v49, %v1127_v57  ;;  %v339_v41 = vsel %vm1174_vm15, %v1070_v30, %v335_v31 }
  0xba   : > { %v292_v16 = vmul.f32 %v1148_v17, %v291_v24  ;;  %v436_v43 = vmul.f32 %v339_v41, %v930_v27  ;;  %v329_v54 = vsel %vm1192_vm3, %v1080_v1, %v325_v9  ;;  %vm297_vm11 = vweird.f32 %v1148_v17 }
  0xbb   : > { %v303_v39 = vmul.f32 0.5, %v302_v26  ;;  %v315_v7 = vmul.f32 %v1105_v48, %v314_v19  ;;  %v282_v4 = vmul.f32 %v1172_v49, %v281_v40  ;;  %v435_v27 = vmul.f32 %v329_v54, %v933_v28  ;;  %vm298_vm12 = vmor %vm296_vm10, %vm297_vm11 }
  0xbc   : > { %642 = vmatpush.xpose.msk.msra.mxu0 %vm205_vm0, %v440_v15  ;;  %v293_v30 = vmul.f32 0.5, %v292_v16  ;;  %vm286_vm13 = vweird.f32 %v1127_v57  ;;  %vm287_vm14 = vweird.f32 %v1172_v49  ;;  %vm276_vm1 = vweird.f32 %v1145_v44 }
  0xbd   : > { %v304_v47 = vsub.f32 1.5, %v303_v39  ;;  %v283_v55 = vmul.f32 0.5, %v282_v4  ;;  %v319_v59 = vsel %vm318_vm6, %v1105_v48, %v315_v7  ;;  %vm288_vm15 = vmor %vm286_vm13, %vm287_vm14  ;;  %v520_v11 = vstv %s654_s6 }
  0xbe   : > { %v733_v62 = vpop.eup %732  ;;  %v294_v6 = vsub.f32 1.5, %v293_v30  ;;  %v434_v1 = vmul.f32 %v319_v59, %v936_v29 }
  0xbf   : > { %v271_v50 = vmul.f32 %v733_v62, %v1145_v44  ;;  %v305_v2 = vmul.f32 %v1134_v10, %v304_v47  ;;  %v284_v34 = vsub.f32 1.5, %v283_v55  ;;  %vm277_vm2 = vweird.f32 %v733_v62 }
  0xc0   : > { %643 = vmatpush.xpose.msk.msra.mxu0 %vm205_vm0, %v439_v13  ;;  %v295_v28 = vmul.f32 %v1148_v17, %v294_v6  ;;  %vm278_vm3 = vmor %vm276_vm1, %vm277_vm2 }
  0xc1   : > { %v272_v56 = vmul.f32 %v733_v62, %v271_v50  ;;  %v309_v25 = vsel %vm308_vm9, %v1134_v10, %v305_v2  ;;  %v285_v29 = vmul.f32 %v1172_v49, %v284_v34  ;;  %v172_v10 = vmul.f32 64.0, %v171_v8 }
  0xc2   : > { %v433_v48 = vmul.f32 %v309_v25, %v948_v36  ;;  %v299_v15 = vsel %vm298_vm12, %v1148_v17, %v295_v28 }
  0xc3   : > { %v273_v61 = vmul.f32 0.5, %v272_v56  ;;  %v432_v63 = vmul.f32 %v299_v15, %v951_v37  ;;  %v289_v57 = vsel %vm288_vm15, %v1172_v49, %v285_v29  ;;  %v517_v37 = vlaneseq }
  0xc4   : > { %644 = vmatpush.xpose.msk.msra.mxu0 %vm205_vm0, %v438_v52  ;;  %v431_v36 = vmul.f32 %v289_v57, %v954_v38 }
  0xc5   : > { %v274_v46 = vsub.f32 1.5, %v273_v61  ;;  %v518_v12 = vand.u32 127, %v517_v37 }
  0xc7   : > { %v275_v3 = vmul.f32 %v733_v62, %v274_v46  ;;  %v521_v51 = vadd.s32 %v520_v11, %v518_v12 }
  0xc8   : > { %645 = vmatpush.xpose.msk.msra.mxu0 %vm205_vm0, %v437_v35 }
  0xc9   : > { %v279_v5 = vsel %vm278_vm3, %v733_v62, %v275_v3 }
  0xca   : > { %v430_v14 = vmul.f32 %v279_v5, %v966_v45 }
  0xcc   : > { %646 = vmatpush.xpose.msk.msra.mxu0 %vm205_vm0, %v436_v43 }
  0xd0   : > { %647 = vmatpush.xpose.msk.msra.mxu0 %vm205_vm0, %v435_v27 }
  0xd4   : > { %648 = vmatpush.xpose.msk.msra.mxu0 %vm205_vm0, %v434_v1 }
  0xd8   : > { %649 = vmatpush.xpose.msk.msra.mxu0 %vm205_vm0, %v433_v48 }
  0xdc   : > { %650 = vmatpush.xpose.msk.msra.mxu0 %vm205_vm0, %v432_v63 }
  0xe0   : > { %651 = vmatpush.xpose.msk.msra.mxu0 %vm205_vm0, %v431_v36 }
  0xe4   : > { %652 = vmatpush.xpose.msk.msra.mxu0 %vm205_vm0, %v430_v14 }
  0xe7   : > { %653 = vmatmul.msk.f32.vlgmr.msra.gmra.mxu0 %vm205_vm0, %v172_v10 }
 0x129   : > { %v525_v38 = vpop.permute.xlu1 %524 }
 0x12a   : > { %vm526_vm4 = vcmp.eq.s32.totalorder %v521_v51, %v525_v38 }
 0x164   : > { %v514_v44 = vpop.f32.mrf.mxu0 }
 0x165   : > { %v527_v13 = vsel %vm526_vm4, %v514_v44, 0.0 }
 0x166   : > { %528 = vadd.xlane.f32.xlu2 %v527_v13 }
 0x1d9   : > { %v529_v17 = vpop.xlane.xlu2 %528 }
 0x1da   : > { %v530_v60 = vmul.f32 0.015625, %v529_v17 }
 0x1dc   : > { %v531_v45 = vmul.f32 %v530_v60, %v530_v60  ;;  %v546_v33 = vmul.f32 0.87758255, %v530_v60  ;;  %v655_v35 = vadd.f32 -0.23971277, %v530_v60  ;;  %vm549_vm6 = vcmp.gt.f32.partialorder %v530_v60, -0.87758255 }
 0x1de   : > { %v532_v21 = vsub.f32 1.0, %v531_v45 }
 0x1e0   : > { %v533_v32 = vmax.f32 %v532_v21, 0.0 }
 0x1e2   : > { %734 = vrsqrt.f32 %v533_v32  ;;  %vm541_vm0 = vcmp.eq.f32.partialorder %v533_v32, inf  ;;  %v544_v58 = vand.u32 2147483648, %v533_v32  ;;  %vm543_vm5 = vcmp.eq.f32.partialorder %v533_v32, 0.0 }
 0x1e8   : > { %v735_v22 = vpop.eup %734 }
 0x1e9   : > { %v535_v53 = vmul.f32 %v735_v22, %v533_v32 }
 0x1eb   : > { %v536_v18 = vmul.f32 %v735_v22, %v535_v53 }
 0x1ed   : > { %v537_v23 = vmul.f32 0.5, %v536_v18 }
 0x1ef   : > { %v538_v24 = vsub.f32 1.5, %v537_v23 }
 0x1f1   : > { %v539_v52 = vmul.f32 %v735_v22, %v538_v24 }
 0x1f3   : > { %v540_v26 = vmul.f32 %v539_v52, %v533_v32 }
 0x1f5   : > { %v542_v31 = vsel %vm541_vm0, %v533_v32, %v540_v26 }
 0x1f6   : > { %v545_v49 = vsel %vm543_vm5, %v544_v58, %v542_v31 }
 0x1f7   : > { %v547_v19 = vmul.f32 0.47942555, %v545_v49 }
 0x1f9   : > { %v548_v16 = vsub.f32 %v546_v33, %v547_v19 }
 0x1fb   : > { %v551_v9 = vsel %vm549_vm6, %v548_v16, %v655_v35 }
 0x1fc   : > { %v552_v39 = vmul.f32 64.0, %v551_v9 }
 0x1fe   : > { %v553_v40 = vsel %vm526_vm4, %v552_v39, %v514_v44 }
 0x1ff   : > { %554 = vst [vmem:[%s164_s19] sm:$0xff] %v553_v40 }
 0x200   : > { %763 = shalt.err (!%p760_p3)
}
 0x201   : > { %660 = dma.vmem_to_hbm [thread:$0]  (%p859_p5), %s569_s20, 128, %s571_s24, %s556_s16  }
 0x202 PF: > { %p666_p4 = scmp.ge.s32.totalorder %s798_s15, 2  ;;  %s582_s5 = sand.u32 1, %s786_s12  }
 0x203   : > { %s583_s6 = scalar_lea.sflag [#allocation3], %s582_s5 }
 0x204   : > { %p663_p7 = pnand %p666_p4, %p863_p6 }
 0x206   : > { %p664_p8 = pneg %p663_p7 }
 0x208   : > { %781 = dma.done.wait (%p664_p8), %s583_s6, 128  }
 0x209   : > { %783 = vsyncadd (%p664_p8), %s583_s6, 4294967168  ;;  %p13_p9 = scmp.ge.s32.totalorder %s846_s18, 4   ;;  %s1296_s12 = smov %s790_s13 }
 0x20a   : > { %s1297_s13 = smov %s794_s14  ;;  %s1298_s14 = smov %s857_s21 }
 0x20b   : > { %s1299_s15 = smov %s846_s18  ;;  %15 = sbr.rel (!%p13_p9) target bundleno = 3 (0x3), region = 67 }
 0x210   :  { %589 = vsyncpa [#allocation3], 1 }
 0x211   :  { %591 = vsyncpa [#allocation3 + $0x1], 1 }

</bundles_post_ra>
